<compile_context>
chip_gen: v6e
topology: v6e:2x2x1
jax: 0.10.0
libtpu: 0.0.40
codegen_flags: <defaults>
</compile_context>

<pallas_src>
import jax
import jax.numpy as jnp
from jax.experimental import pallas as pl
from jax.experimental.pallas import tpu as pltpu


# ---------------------------------------------------------------------------
# Kernels (VPU elementwise; HBM-bound).  Param math kept in float32.
# ---------------------------------------------------------------------------
def _actnorm_row_kernel(x_ref, p_ref, h_ref):
    # x_ref/h_ref: (TR, TL) tile.  p_ref: (TR, 2) f32 -> col 0 = scale, col 1 = bias.
    x = x_ref[...].astype(jnp.float32)
    p = p_ref[...]
    h_ref[...] = (x * p[:, 0:1] + p[:, 1:2]).astype(h_ref.dtype)


def _actnorm_lane_kernel(x_ref, p_ref, h_ref):
    # x_ref/h_ref: (TR, TL) tile.  p_ref: (2, TL) f32 -> row 0 = scale, row 1 = bias.
    x = x_ref[...].astype(jnp.float32)
    p = p_ref[...]
    h_ref[...] = (x * p[0:1, :] + p[1:2, :]).astype(h_ref.dtype)


# ---------------------------------------------------------------------------
# Block / VMEM sizing helpers.
# ---------------------------------------------------------------------------
_TARGET_BLOCK_BYTES = 8 * 1024 * 1024   # ~8 MiB in + 8 MiB out per grid step
_MAX_BLOCK_LANES = 128 * 1024           # bounds lane-padded parameter buffers
_SMALL_TENSOR_BYTES = 1 * 1024 * 1024   # below this, plain XLA wins


def _choose_block(rows, lanes, itemsize, target_bytes=_TARGET_BLOCK_BYTES):
    """Pick a (row, lane) block.

    Lane (last) dim: full extent when it fits, otherwise a 128-multiple cap
    (Pallas masks the ragged last block), so a large non-128-multiple extent can
    never blow the VMEM plan.  Row dim: full extent or a multiple of the
    dtype-native sublane tile (8 for f32, 16 for bf16, 32 for int8/fp8).
    """
    sub = max(8, 32 // itemsize)
    lane_cap = min(_MAX_BLOCK_LANES,
                   max(128, (target_bytes // (sub * itemsize)) // 128 * 128))
    t_lane = lanes if lanes <= lane_cap else lane_cap
    max_rows = max(1, target_bytes // (t_lane * itemsize))
    if rows <= max_rows:
        t_row = rows
    else:
        t_row = max(sub, (max_rows // sub) * sub)
    return t_row, t_lane, sub


def _ensure_two_blocks(rows, lanes, t_row, t_lane, sub, total_bytes):
    """Guarantee >= 2 grid blocks for mid-size tensors so v7x's 2 TCs both work."""
    if total_bytes < 2 * 1024 * 1024:
        return t_row, t_lane
    if pl.cdiv(rows, t_row) * pl.cdiv(lanes, t_lane) > 1:
        return t_row, t_lane
    if rows >= 2 * sub:
        t_row = max(sub, (pl.cdiv(rows, 2) // sub) * sub)      # multiple of sub
    elif lanes >= 256:
        t_lane = max(128, (pl.cdiv(lanes, 2) // 128) * 128)    # 128-multiple
    return t_row, t_lane


def _vmem_limit_bytes(t_row, t_lane, itemsize, row_params):
    """Request VMEM from the actual pipeline footprint (+ headroom), not a fixed 48 MiB."""
    blk = t_row * t_lane * itemsize                     # one x block / one h block
    if row_params:
        pblk = ((t_row + 7) // 8) * 8 * 128 * 4         # (TR, 2) f32, lane-padded to 128
    else:
        pblk = 8 * ((t_lane + 127) // 128) * 128 * 4    # (2, TL) f32, sublane-padded to 8
    footprint = 2 * (2 * blk + pblk)                    # double-buffered in + out + params
    return int(min(max(footprint + (8 << 20), 32 << 20), 56 << 20))


# ---------------------------------------------------------------------------
# Public wrapper.
# ---------------------------------------------------------------------------
def actnorm_forward(x, loc, scale, *, logdet=True, use_pallas=None):
    """ActNorm forward.

    Args:
      x:     (N, C, H, W) activations, or (N, C) which is treated as H = W = 1.
      loc:   (1, C, 1, 1) per-channel shift.
      scale: (1, C, 1, 1) per-channel scale.
      logdet: also return the per-sample log-determinant (float32), like the module.
      use_pallas: None = auto (bypass Pallas for tiny tensors); True/False forces.
    Returns:
      h with the same shape/dtype as x [, logdet of shape (N,) float32].
    """
    orig_ndim = x.ndim
    x4 = x[:, :, None, None] if orig_ndim == 2 else x
    N, C, H, W = x4.shape
    HW = H * W
    dtype = x.dtype
    itemsize = x4.dtype.itemsize

    # Per-channel params in float32; pre-fold bias = scale * loc (h = scale*x + bias).
    scale_c = scale.reshape(C).astype(jnp.float32)
    loc_c = loc.reshape(C).astype(jnp.float32)
    bias_c = scale_c * loc_c

    total_bytes = N * C * HW * itemsize
    if use_pallas is None:
        use_pallas = total_bytes >= _SMALL_TENSOR_BYTES

    if not use_pallas:
        # Small-tensor bypass: XLA fuses this for free; pallas_call overhead would dominate.
        h4 = (scale_c[None, :, None, None]
              * (x4.astype(jnp.float32) + loc_c[None, :, None, None])).astype(dtype)
    else:
        row_params = (HW % 128 == 0) and (HW >= 512)
        if row_params:
            # Path A: (N*C, H*W) rows are contiguous NCHW slices; params per row.
            R, L = N * C, HW
            x2 = x4.reshape(R, L)
            params = jnp.stack([jnp.tile(scale_c, N), jnp.tile(bias_c, N)], axis=1)  # (R, 2)
            kernel = _actnorm_row_kernel
        else:
            # Path B: (N, C*H*W) gives a lane-dense output tile; params per lane.
            R, L = N, C * HW
            x2 = x4.reshape(R, L)
            params = jnp.stack([jnp.repeat(scale_c, HW), jnp.repeat(bias_c, HW)], axis=0)  # (2, L)
            kernel = _actnorm_lane_kernel

        t_row, t_lane, sub = _choose_block(R, L, itemsize)
        t_row, t_lane = _ensure_two_blocks(R, L, t_row, t_lane, sub, total_bytes)
        grid = (pl.cdiv(R, t_row), pl.cdiv(L, t_lane))

        if row_params:
            p_spec = pl.BlockSpec((t_row, 2), lambda i, j: (i, 0))
        else:
            p_spec = pl.BlockSpec((2, t_lane), lambda i, j: (0, j))

        h2 = pl.pallas_call(
            kernel,
            out_shape=jax.ShapeDtypeStruct((R, L), dtype),
            grid_spec=pltpu.PrefetchScalarGridSpec(
                num_scalar_prefetch=0,
                grid=grid,
                in_specs=[
                    pl.BlockSpec((t_row, t_lane), lambda i, j: (i, j)),
                    p_spec,
                ],
                out_specs=pl.BlockSpec((t_row, t_lane), lambda i, j: (i, j)),
            ),
            compiler_params=pltpu.CompilerParams(
                dimension_semantics=("parallel", "parallel"),
                vmem_limit_bytes=_vmem_limit_bytes(t_row, t_lane, itemsize, row_params),
            ),
        )(x2, params)
        h4 = h2.reshape(N, C, H, W)

    h = h4.reshape(N, C) if orig_ndim == 2 else h4

    if logdet:
        # O(C) reduction: once, in plain JAX, float32 (matches PyTorch's f32 result).
        ld_scalar = HW * jnp.sum(jnp.log(jnp.abs(scale_c)))
        ld = ld_scalar.astype(jnp.float32) * jnp.ones((N,), jnp.float32)
        return h, ld
    return h

    # TODO(synk): data-dependent first-batch initialization (self.initialize) is a
    # training-time stateful side effect; only the initialized forward path is kernelized.
    # TODO(synk): reverse() path (h = x / scale - loc) not kernelized (same structure:
    # pre-fold scale' = 1/scale, bias' = -loc and reuse the same kernels if needed).


if __name__ == "__main__":
    key = jax.random.PRNGKey(0)
    kx, kl, ks, kx2, kx3 = jax.random.split(key, 5)

    N, C = 2, 4
    # Module __init__ gives loc=0 / scale=1; use non-trivial deterministic values
    # so the affine transform is actually exercised.
    loc = 0.1 * jax.random.normal(kl, (1, C, 1, 1), dtype=jnp.float32)
    scale = 1.0 + 0.1 * jax.random.normal(ks, (1, C, 1, 1), dtype=jnp.float32)

    def ref(xin):
        h_r = scale * (xin + loc)
        ld_r = (xin.shape[2] * xin.shape[3]
                * jnp.sum(jnp.log(jnp.abs(scale)))) * jnp.ones((xin.shape[0],), jnp.float32)
        return h_r, ld_r

    # 1) Lane-dense (Path B) Pallas kernel: H*W = 256 (< 512).
    x_b = jax.random.normal(kx, (N, C, 16, 16), dtype=jnp.float32)
    h_b, ld_b = actnorm_forward(x_b, loc, scale, logdet=True, use_pallas=True)

    # 2) Row-param (Path A) Pallas kernel: H*W = 1024 (128-multiple, >= 512).
    x_a = jax.random.normal(kx2, (N, C, 32, 32), dtype=jnp.float32)
    h_a, ld_a = actnorm_forward(x_a, loc, scale, logdet=True, use_pallas=True)

    # 3) Default (auto) path on a 2D input: tiny -> plain-JAX bypass + squeeze.
    x_t = jax.random.normal(kx3, (N, C), dtype=jnp.float32)
    h_t, ld_t = actnorm_forward(x_t, loc, scale, logdet=True)

    jax.block_until_ready((h_b, ld_b, h_a, ld_a, h_t, ld_t))

    hb_ref, ldb_ref = ref(x_b)
    ha_ref, lda_ref = ref(x_a)
    ht_ref = (scale * (x_t[:, :, None, None] + loc)).reshape(N, C)
    ldt_ref = jnp.sum(jnp.log(jnp.abs(scale))) * jnp.ones((N,), jnp.float32)

    assert jnp.allclose(h_b, hb_ref, atol=1e-5, rtol=1e-5)
    assert jnp.allclose(ld_b, ldb_ref, atol=1e-4, rtol=1e-5)
    assert jnp.allclose(h_a, ha_ref, atol=1e-5, rtol=1e-5)
    assert jnp.allclose(ld_a, lda_ref, atol=1e-4, rtol=1e-5)
    assert jnp.allclose(h_t, ht_ref, atol=1e-5, rtol=1e-5)
    assert jnp.allclose(ld_t, ldt_ref, atol=1e-4, rtol=1e-5)

    print("KERNEL_OK")
</pallas_src>

<mosaic_0001>
module attributes {stable_mosaic.version = 11 : i64} {
  func.func @_actnorm_lane_kernel(%arg0: i32, %arg1: i32, %arg2: memref<2x1024xf32, #tpu.memory_space<vmem>>, %arg3: memref<2x1024xf32, #tpu.memory_space<vmem>>, %arg4: memref<2x1024xf32, #tpu.memory_space<vmem>>) attributes {dimension_semantics = [#tpu.dimension_semantics<parallel>, #tpu.dimension_semantics<parallel>], iteration_bounds = array<i64: 1, 1>, scalar_prefetch = 0 : i64, scratch_operands = 0 : i64, tpu.core_type = #tpu.core_type<tc>, window_params = [{transform_indices = @transform_0, window_bounds = array<i64: 2, 1024>}, {transform_indices = @transform_1, window_bounds = array<i64: 2, 1024>}, {transform_indices = @transform_2, window_bounds = array<i64: 2, 1024>}]} {
    %c0 = arith.constant 0 : index
    %c0_0 = arith.constant 0 : index
    %0 = vector.load %arg2[%c0, %c0_0] : memref<2x1024xf32, #tpu.memory_space<vmem>>, vector<2x1024xf32>
    %c0_1 = arith.constant 0 : index
    %c0_2 = arith.constant 0 : index
    %1 = vector.load %arg3[%c0_1, %c0_2] : memref<2x1024xf32, #tpu.memory_space<vmem>>, vector<2x1024xf32>
    %2 = vector.extract_strided_slice %1 {offsets = [0, 0], sizes = [1, 1024], strides = [1, 1]} : vector<2x1024xf32> to vector<1x1024xf32>
    %3 = vector.broadcast %2 : vector<1x1024xf32> to vector<2x1024xf32>
    %4 = arith.mulf %0, %3 : vector<2x1024xf32>
    %5 = vector.extract_strided_slice %1 {offsets = [1, 0], sizes = [1, 1024], strides = [1, 1]} : vector<2x1024xf32> to vector<1x1024xf32>
    %6 = vector.broadcast %5 : vector<1x1024xf32> to vector<2x1024xf32>
    %7 = arith.addf %4, %6 : vector<2x1024xf32>
    %c0_3 = arith.constant 0 : index
    %c0_4 = arith.constant 0 : index
    %8 = vector.load %arg4[%c0_3, %c0_4] : memref<2x1024xf32, #tpu.memory_space<vmem>>, vector<2x1024xf32>
    tpu.vector_store %arg4[%c0_3, %c0_4], %7 {strides = array<i32>} : memref<2x1024xf32, #tpu.memory_space<vmem>>, vector<2x1024xf32>,
    return
  }
  func.func @transform_0(%arg0: i32, %arg1: i32) -> (i32, i32) {
    %c0_i32 = arith.constant 0 : i32
    return %arg0, %arg1 : i32, i32
  }
  func.func @transform_1(%arg0: i32, %arg1: i32) -> (i32, i32) {
    %c0_i32 = arith.constant 0 : i32
    %c0_i32_0 = arith.constant 0 : i32
    return %c0_i32, %arg1 : i32, i32
  }
  func.func @transform_2(%arg0: i32, %arg1: i32) -> (i32, i32) {
    %c0_i32 = arith.constant 0 : i32
    return %arg0, %arg1 : i32, i32
  }
}

</mosaic_0001>

<bundles_post_ra>
// kernel: tpu_custom_call.1
= control target key start
LH: loop header
LB: loop body
LE: loop exit
PB: predicated region body
PF: predicated region fallthrough
CT: control target
= control target key end

     0   :  { %7 = vsyncpa [#allocation3], 0  ;;  %s394_s0 = inlined_call_operand.hbm [shape: f32[2,1024], index: 0, kind: input, shape index: {}]   ;;  %s395_s1 = inlined_call_operand.hbm [shape: f32[2,1024], index: 1, kind: input, shape index: {}]   ;;  %s396_s2 = inlined_call_operand.hbm [shape: f32[2,1024], index: 2, kind: output, shape index: {}]  }
   0x1   :  { %8 = vsyncpa [#allocation6], 0 }
   0x2   :  { %9 = vsyncpa [#allocation4], 0  ;;  %s366_s9 = smov [#allocation2]   ;;  %s367_s11 = smov [#allocation5]  }
   0x3   :  { %s16_s10 = sshll.u32 %s366_s9, 4  ;;  %s26_s12 = sshll.u32 %s367_s11, 4  ;;  %s17_s10 = int_to_ptr.vmem [resolvable:$true] %s16_s10  ;;  %s27_s12 = int_to_ptr.vmem [resolvable:$true] %s26_s12 }
   0x4   :  { %s308_s13 = scalar_lea.vmem %s17_s10, 256  ;;  %p313_p1 = scmp.lt.s32.totalorder %s17_s10, %s17_s10 }
   0x5   :  { %p309_p0 = scmp.ne.s32.totalorder %s17_s10, %s308_s13  ;;  %p314_p2 = scmp.lt.s32.totalorder %s308_s13, %s308_s13 }
   0x7   :  { %p315_p3 = por %p314_p2, %p313_p1 }
   0x9   :  { %p316_p4 = pnand %p315_p3, %p309_p0 }
   0xb   :  { %319 = shalt.err (!%p316_p4)
}
   0xc   :  { %19 = dma.hbm_to_vmem [thread:$0]  %s394_s0, 256, %s17_s10, [#allocation3]  }
   0xd   :  { %s328_s16 = scalar_lea.vmem %s27_s12, 256  ;;  %p333_p6 = scmp.lt.s32.totalorder %s27_s12, %s27_s12 }
   0xe   :  { %p329_p5 = scmp.ne.s32.totalorder %s27_s12, %s328_s16  ;;  %p334_p7 = scmp.lt.s32.totalorder %s328_s16, %s328_s16 }
  0x10   :  { %p335_p8 = por %p334_p7, %p333_p6 }
  0x12   :  { %p336_p9 = pnand %p335_p8, %p329_p5 }
  0x14   :  { %339 = shalt.err (!%p336_p9)
}
  0x15   :  { %29 = dma.hbm_to_vmem [thread:$0]  %s395_s1, 256, %s27_s12, [#allocation6]  }
  0x16   :  { %360 = dma.done.wait [#allocation3], 256  }
  0x17   :  { %361 = vsyncadd [#allocation3], 4294967040 }
  0x18   :  { %362 = dma.done.wait [#allocation6], 256  }
  0x19   :  { %363 = vsyncadd [#allocation6], 4294967040  ;;  %v42_v0 = vlaneseq  ;;  %v368_v1 = vmov 1983009808   ;;  %v38_v13 = vld [vmem:[#allocation5] sm:$0xff]  ;;  %v39_v23 = vld [vmem:[#allocation5 + $0x8] sm:$0xff] }
  0x1a   :  { %v125_v2 = vunpack.c.l.s4 %v368_v1  ;;  %v36_v44 = vld [vmem:[#allocation2] sm:$0xff]  ;;  %v37_v1 = vld [vmem:[#allocation2 + $0x8] sm:$0xff]  ;;  %s369_s0 = smov [#allocation7]  }
  0x1b   :  { %v43_v3 = vshrl.u32 %v42_v0, 7  ;;  %s286_s1 = sshll.u32 %s369_s0, 4  ;;  %s287_s1 = int_to_ptr.vmem [resolvable:$true] %s286_s1 }
  0x1c   :  { %v126_v4 = vunpack.c.0.s8 %v125_v2  ;;  %s340_s19 = scalar_lea.vmem %s287_s1, 256  ;;  %p345_p11 = scmp.lt.s32.totalorder %s287_s1, %s287_s1 }
  0x1d   :  { %v44_v5 = vsub.s32 0, %v43_v3  ;;  %v48_v6 = vsub.s32 2, %v43_v3  ;;  %v52_v7 = vsub.s32 4, %v43_v3  ;;  %v56_v8 = vsub.s32 6, %v43_v3  ;;  %p341_p10 = scmp.ne.s32.totalorder %s287_s1, %s340_s19  ;;  %p346_p12 = scmp.lt.s32.totalorder %s340_s19, %s340_s19 }
  0x1e   :  { %v162_v9 = vsub.s32 1, %v43_v3  ;;  %v166_v10 = vsub.s32 3, %v43_v3  ;;  %v170_v11 = vsub.s32 5, %v43_v3  ;;  %v174_v12 = vsub.s32 7, %v43_v3 }
  0x1f   :  { %v129_v14 = vsub.s32 %v126_v4, %v43_v3  ;;  %v45_v15 = vrot.slane %v38_v13, %v44_v5  ;;  %v49_v16 = vrot.slane %v38_v13, %v48_v6  ;;  %v53_v17 = vrot.slane %v38_v13, %v52_v7  ;;  %p347_p13 = por %p346_p12, %p345_p11 }
  0x20   :  { %v57_v18 = vrot.slane %v38_v13, %v56_v8  ;;  %v163_v19 = vrot.slane %v38_v13, %v162_v9  ;;  %v167_v20 = vrot.slane %v38_v13, %v166_v10  ;;  %v171_v21 = vrot.slane %v38_v13, %v170_v11 }
  0x21   :  { %v175_v22 = vrot.slane %v38_v13, %v174_v12  ;;  %v85_v24 = vrot.slane %v45_v15, %v44_v5  ;;  %v89_v25 = vrot.slane %v49_v16, %v44_v5  ;;  %v93_v26 = vrot.slane %v53_v17, %v44_v5  ;;  %p348_p0 = pnand %p347_p13, %p341_p10 }
  0x22   :  { %v97_v27 = vrot.slane %v57_v18, %v44_v5  ;;  %v203_v28 = vrot.slane %v163_v19, %v162_v9  ;;  %v207_v29 = vrot.slane %v167_v20, %v162_v9  ;;  %v211_v30 = vrot.slane %v171_v21, %v162_v9 }
  0x23   :  { %v215_v31 = vrot.slane %v175_v22, %v162_v9  ;;  %v122_v32 = vcombine.low %v85_v24, %v89_v25  ;;  %v61_v34 = vrot.slane %v39_v23, %v44_v5  ;;  %v65_v35 = vrot.slane %v39_v23, %v48_v6 }
  0x24   :  { %v123_v33 = vcombine.low %v93_v26, %v97_v27  ;;  %v240_v36 = vcombine.low %v203_v28, %v207_v29  ;;  %v69_v38 = vrot.slane %v39_v23, %v52_v7  ;;  %v73_v39 = vrot.slane %v39_v23, %v56_v8 }
  0x25   :  { %v241_v37 = vcombine.low %v211_v30, %v215_v31  ;;  %v130_v40 = vrot.slane %v122_v32, %v129_v14  ;;  %v101_v42 = vrot.slane %v61_v34, %v44_v5  ;;  %v105_v43 = vrot.slane %v65_v35, %v44_v5 }
  0x26   :  { %v137_v41 = vrot.slane %v123_v33, %v129_v14  ;;  %v248_v45 = vrot.slane %v240_v36, %v129_v14  ;;  %v109_v47 = vrot.slane %v69_v38, %v44_v5  ;;  %v113_v48 = vrot.slane %v73_v39, %v44_v5 }
  0x27   :  { %v255_v46 = vrot.slane %v241_v37, %v129_v14  ;;  %v139_v50 = vcombine.low %v101_v42, %v105_v43  ;;  %v179_v51 = vrot.slane %v39_v23, %v162_v9  ;;  %v183_v52 = vrot.slane %v39_v23, %v166_v10 }
  0x28   :  { %v138_v49 = vcombine.low %v130_v40, %v137_v41  ;;  %v140_v54 = vcombine.low %v109_v47, %v113_v48  ;;  %v187_v55 = vrot.slane %v39_v23, %v170_v11  ;;  %v191_v56 = vrot.slane %v39_v23, %v174_v12 }
  0x29   :  { %v256_v53 = vcombine.low %v248_v45, %v255_v46  ;;  %v147_v58 = vrot.slane %v139_v50, %v129_v14  ;;  %v219_v59 = vrot.slane %v179_v51, %v162_v9  ;;  %v223_v60 = vrot.slane %v183_v52, %v162_v9 }
  0x2a   :  { %v158_v57 = vmul.f32 %v138_v49, %v36_v44  ;;  %v154_v61 = vrot.slane %v140_v54, %v129_v14  ;;  %v227_v62 = vrot.slane %v187_v55, %v162_v9  ;;  %v231_v63 = vrot.slane %v191_v56, %v162_v9 }
  0x2b   :  { %v257_v2 = vcombine.low %v219_v59, %v223_v60 }
  0x2c   :  { %v276_v0 = vadd.f32 %v256_v53, %v158_v57  ;;  %v155_v3 = vcombine.low %v147_v58, %v154_v61  ;;  %v258_v4 = vcombine.low %v227_v62, %v231_v63 }
  0x2d   :  { %v265_v5 = vrot.slane %v257_v2, %v129_v14 }
  0x2e   :  { %278 = vst [vmem:[#allocation7] sm:$0xff] %v276_v0  ;;  %v159_v6 = vmul.f32 %v155_v3, %v37_v1  ;;  %v272_v7 = vrot.slane %v258_v4, %v129_v14 }
  0x30   :  { %v273_v8 = vcombine.low %v265_v5, %v272_v7 }
  0x32   :  { %v277_v10 = vadd.f32 %v273_v8, %v159_v6 }
  0x34   :  { %279 = vst [vmem:[#allocation7 + $0x8] sm:$0xff] %v277_v10 }
  0x35   :  { %351 = shalt.err (!%p348_p0)
}
  0x36   :  { %289 = dma.vmem_to_hbm [thread:$0]  %s287_s1, 256, %s396_s2, [#allocation4]  }
  0x37   :  { %364 = dma.done.wait [#allocation4], 256  }
  0x38   :  { %365 = vsyncadd [#allocation4], 4294967040 }
  0x39   :  { %293 = vsyncpa [#allocation3], 1 }
  0x3a   :  { %294 = vsyncpa [#allocation6], 1 }
  0x3b   :  { %295 = vsyncpa [#allocation4], 1 }

</bundles_post_ra>
